<compile_context>
chip_gen: v7x
topology: tpu7x:2x2x1
jax: 0.10.0
libtpu: 0.0.40
codegen_flags: <defaults>
</compile_context>

<pallas_src>
import functools

import jax
import jax.numpy as jnp
from jax.experimental import pallas as pl
from jax.experimental.pallas import tpu as pltpu


# ---------------------------------------------------------------------------
# One-time probe: which way does pltpu.roll rotate on this backend?
# ---------------------------------------------------------------------------
@functools.lru_cache(maxsize=None)
def _roll_is_numpy_convention():
    """True iff pltpu.roll(x, s, axis)[..., i] == x[..., (i - s) % n] (np.roll)."""
    def probe(x_ref, o_ref):
        o_ref[...] = pltpu.roll(x_ref[...], shift=1, axis=1)

    x = jnp.broadcast_to(jnp.arange(128, dtype=jnp.float32), (8, 128))
    out = pl.pallas_call(
        probe, out_shape=jax.ShapeDtypeStruct((8, 128), jnp.float32))(x)
    return bool(out[0, 0] == 127.0)


# ---------------------------------------------------------------------------
# Pallas kernel: fused bbox decode on an interleaved lane-dense (rows, C) tile
#   lane coordinate id = lane % 4  ->  0:x1  1:y1  2:x2  3:y2  (C % 4 == 0)
# ---------------------------------------------------------------------------
def _bbox_decode_kernel(boxes_ref, deltas_ref, out_ref, *,
                        mean, std, s_prev, s_next):
    f32 = jnp.float32
    b = boxes_ref[...].astype(f32)      # (rows, C): x1,y1,x2,y2,x1,...
    d = deltas_ref[...].astype(f32)     # (rows, C): dx,dy,dw,dh,dx,...
    C = b.shape[1]

    # Lane-periodic coordinate id and per-lane affine constants (tiny (1, C)
    # rows, broadcast across sublanes by the VPU).
    m4 = jax.lax.broadcasted_iota(jnp.int32, (1, C), 1) % 4
    is_lo = m4 < 2                                          # x1 / y1 lanes
    std_v = jnp.where(m4 == 0, f32(std[0]),
             jnp.where(m4 == 1, f32(std[1]),
              jnp.where(m4 == 2, f32(std[2]), f32(std[3]))))
    mean_v = jnp.where(m4 == 0, f32(mean[0]),
              jnp.where(m4 == 1, f32(mean[1]),
               jnp.where(m4 == 2, f32(mean[2]), f32(mean[3]))))

    # Same-box partner fetches via XLU lane rotations (positive shifts only;
    # wrap-around lanes are never selected because C % 4 == 0).
    from_next = lambda x: pltpu.roll(x, shift=s_next, axis=1)  # x[l] <- x[l+2]
    from_prev = lambda x: pltpu.roll(x, shift=s_prev, axis=1)  # x[l] <- x[l-2]

    dn = d * std_v + mean_v                  # dx,dy,dw,dh (interleaved)

    size_lo = from_next(b) - b               # lanes {0,1}: width, height
    ctr = b + 0.5 * size_lo                  # lanes {0,1}: ctr_x, ctr_y
    pc = ctr + dn * size_lo                  # lanes {0,1}: pred centers

    size_hi = from_prev(size_lo)             # lanes {2,3}: width, height
    half = 0.5 * jnp.exp(dn) * size_hi       # lanes {2,3}: pred_w/2, pred_h/2 (EUP)

    lo_out = pc - from_next(half)            # lanes {0,1}: x1', y1'
    hi_out = from_prev(pc) + half            # lanes {2,3}: x2', y2'

    # Single full-tile, lane-dense store.
    out_ref[...] = jnp.where(is_lo, lo_out, hi_out).astype(out_ref.dtype)


# ---------------------------------------------------------------------------
# Wrapper: free flat reshape, tiny tail pad, block/grid selection
# ---------------------------------------------------------------------------
_LANE = 512        # lane width of the flattened slab (multiple of 4 and 128)
_MAX_ROWS = 512    # (512, 512) f32 = 1 MiB per operand per grid step


def bbox_transform(boxes, deltas,
                   mean=(0.0, 0.0, 0.0, 0.0),
                   std=(0.1, 0.1, 0.2, 0.2)):
    """BBoxTransform.forward: boxes, deltas (B, N, 4) -> pred_boxes (B, N, 4)."""
    assert boxes.shape == deltas.shape and boxes.shape[-1] == 4
    B, N = boxes.shape[0], boxes.shape[1]
    total = B * N * 4

    out_dtype = jnp.result_type(boxes.dtype, deltas.dtype)
    if not jnp.issubdtype(out_dtype, jnp.floating):
        out_dtype = jnp.float32

    # --- slab geometry -----------------------------------------------------
    C = _LANE
    R = (total + C - 1) // C                       # raw row count
    G = max(1, (R + _MAX_ROWS - 1) // _MAX_ROWS)   # grid steps
    if G > 1 and G % 2 == 1:
        G += 1                                     # even grid: both v7x TCs busy
    row_block = (((R + G - 1) // G) + 7) // 8 * 8  # sublane multiple of 8
    Rp = G * row_block
    padded_total = Rp * C

    # Free metadata reshape of the contiguous (B, N, 4) arrays; only a tiny
    # tail pad (< one block) when the geometry does not divide exactly.
    boxes_flat = boxes.reshape(-1)
    deltas_flat = deltas.reshape(-1)
    if padded_total != total:
        pad = padded_total - total
        boxes_flat = jnp.pad(boxes_flat, (0, pad))     # zeros -> finite outputs
        deltas_flat = jnp.pad(deltas_flat, (0, pad))
    boxes2d = boxes_flat.reshape(Rp, C)
    deltas2d = deltas_flat.reshape(Rp, C)

    # Roll shifts for "partner +2 lanes" / "partner -2 lanes" (convention-safe).
    if _roll_is_numpy_convention():
        s_prev, s_next = 2, C - 2
    else:
        s_prev, s_next = C - 2, 2

    # mean/std are static module constants baked into the kernel.
    # TODO(synk): if mean/std ever become traced arrays, pass them via SMEM
    # instead of baking them as compile-time constants.
    kernel = functools.partial(
        _bbox_decode_kernel,
        mean=tuple(float(v) for v in mean),
        std=tuple(float(v) for v in std),
        s_prev=s_prev, s_next=s_next)

    bytes_accessed = padded_total * (jnp.dtype(boxes2d.dtype).itemsize
                                     + jnp.dtype(deltas2d.dtype).itemsize
                                     + jnp.dtype(out_dtype).itemsize)
    cost = pl.CostEstimate(flops=13 * padded_total,
                           transcendentals=padded_total,
                           bytes_accessed=bytes_accessed)

    out2d = pl.pallas_call(
        kernel,
        out_shape=jax.ShapeDtypeStruct((Rp, C), out_dtype),
        grid=(G,),
        in_specs=[pl.BlockSpec((row_block, C), lambda i: (i, 0)),
                  pl.BlockSpec((row_block, C), lambda i: (i, 0))],
        out_specs=pl.BlockSpec((row_block, C), lambda i: (i, 0)),
        compiler_params=pltpu.CompilerParams(
            dimension_semantics=("parallel",)),
        cost_estimate=cost,
    )(boxes2d, deltas2d)

    return out2d.reshape(-1)[:total].reshape(B, N, 4)


# ---------------------------------------------------------------------------
# Pure-JAX reference (mirrors the PyTorch forward) — correctness check only
# ---------------------------------------------------------------------------
def ref_forward(boxes, deltas, mean, std):
    mean = jnp.asarray(mean, jnp.float32)
    std = jnp.asarray(std, jnp.float32)
    widths = boxes[:, :, 2] - boxes[:, :, 0]
    heights = boxes[:, :, 3] - boxes[:, :, 1]
    ctr_x = boxes[:, :, 0] + 0.5 * widths
    ctr_y = boxes[:, :, 1] + 0.5 * heights
    dx = deltas[:, :, 0] * std[0] + mean[0]
    dy = deltas[:, :, 1] * std[1] + mean[1]
    dw = deltas[:, :, 2] * std[2] + mean[2]
    dh = deltas[:, :, 3] * std[3] + mean[3]
    pred_ctr_x = ctr_x + dx * widths
    pred_ctr_y = ctr_y + dy * heights
    pred_w = jnp.exp(dw) * widths
    pred_h = jnp.exp(dh) * heights
    return jnp.stack(
        [pred_ctr_x - 0.5 * pred_w, pred_ctr_y - 0.5 * pred_h,
         pred_ctr_x + 0.5 * pred_w, pred_ctr_y + 0.5 * pred_h],
        axis=2,
    )


# ---------------------------------------------------------------------------
# Main
# ---------------------------------------------------------------------------
if __name__ == "__main__":
    B, N = 2, 8   # small shapes: batch=2, 8 boxes per image, 4 coords each

    key = jax.random.PRNGKey(0)
    k_xy, k_wh, k_d = jax.random.split(key, 3)

    xy = jax.random.uniform(k_xy, (B, N, 2), jnp.float32, 0.0, 50.0)
    wh = jax.random.uniform(k_wh, (B, N, 2), jnp.float32, 1.0, 30.0)
    boxes = jnp.concatenate([xy, xy + wh], axis=-1)          # valid x1<x2, y1<y2
    deltas = 0.5 * jax.random.normal(k_d, (B, N, 4), jnp.float32)

    mean = (0.0, 0.0, 0.0, 0.0)
    std = (0.1, 0.1, 0.2, 0.2)

    out = jax.block_until_ready(bbox_transform(boxes, deltas, mean, std))
    ref = jax.block_until_ready(ref_forward(boxes, deltas, mean, std))

    assert out.shape == (B, N, 4)
    assert bool(jnp.all(jnp.isfinite(out)))
    assert jnp.allclose(out, ref, rtol=1e-5, atol=1e-5), \
        f"max abs err {float(jnp.max(jnp.abs(out - ref)))}"

    print("KERNEL_OK")
</pallas_src>

<mosaic_0001>
module attributes {stable_mosaic.version = 11 : i64} {
  func.func @probe(%arg0: memref<8x128xf32, #tpu.memory_space<vmem>>, %arg1: memref<8x128xf32, #tpu.memory_space<vmem>>) attributes {dimension_semantics = [], scalar_prefetch = 0 : i64, scratch_operands = 0 : i64, tpu.core_type = #tpu.core_type<tc>} {
    %c0 = arith.constant 0 : index
    %c0_0 = arith.constant 0 : index
    %0 = vector.load %arg0[%c0, %c0_0] : memref<8x128xf32, #tpu.memory_space<vmem>>, vector<8x128xf32>
    %c1_i32 = arith.constant 1 : i32
    %1 = tpu.dynamic_rotate %0 by %c1_i32 dim 1 : vector<8x128xf32>, i32 -> vector<8x128xf32>
    %c0_1 = arith.constant 0 : index
    %c0_2 = arith.constant 0 : index
    %2 = vector.load %arg1[%c0_1, %c0_2] : memref<8x128xf32, #tpu.memory_space<vmem>>, vector<8x128xf32>
    tpu.vector_store %arg1[%c0_1, %c0_2], %1 {strides = array<i32>} : memref<8x128xf32, #tpu.memory_space<vmem>>, vector<8x128xf32>,
    return
  }
}

</mosaic_0001>

<bundles_post_ra>
// kernel: tpu_custom_call.1
= control target key start
LH: loop header
LB: loop body
LE: loop exit
PB: predicated region body
PF: predicated region fallthrough
CT: control target
= control target key end

     0   :  { %6 = vsyncpa [#allocation3], 0  ;;  %s128_s0 = inlined_call_operand.hbm [shape: f32[8,128], index: 0, kind: input, shape index: {}]   ;;  %s129_s1 = inlined_call_operand.hbm [shape: f32[8,128], index: 1, kind: output, shape index: {}]  }
   0x1   :  { %7 = vsyncpa [#allocation4], 0  ;;  %s91_s6 = smov [#allocation2]   ;;  %s43_s10 = scalar_lea.hbm %s128_s0, 128 }
   0x2   :  { %s14_s7 = sshll.u32 %s91_s6, 4  ;;  %p44_p0 = scmp.ne.s32.totalorder %s128_s0, %s43_s10  ;;  %s15_s7 = int_to_ptr.vmem [resolvable:$true] %s14_s7 }
   0x3   :  { %p47_p1 = scmp.lt.u32.totalorder %s43_s10, %s128_s0 }
   0x5   :  { %p49_p2 = pnand %p47_p1, %p44_p0 }
   0x7   :  { %52 = shalt.err (!%p49_p2)
}
   0x8   :  { %s53_s15 = scalar_lea.vmem %s15_s7, 128  ;;  %p58_p4 = scmp.lt.s32.totalorder %s15_s7, %s15_s7 }
   0x9   :  { %p54_p3 = scmp.ne.s32.totalorder %s15_s7, %s53_s15  ;;  %p59_p5 = scmp.lt.s32.totalorder %s53_s15, %s53_s15 }
   0xb   :  { %p60_p6 = por %p59_p5, %p58_p4 }
   0xd   :  { %p61_p7 = pnand %p60_p6, %p54_p3 }
   0xf   :  { %64 = shalt.err (!%p61_p7)
}
  0x10   :  { %17 = dma.hbm_to_vmem [thread:$0]  %s128_s0, 128, %s15_s7, [#allocation3]  }
  0x11   :  { %87 = dma.done.wait [#allocation3], 128  }
  0x12   :  { %88 = vsyncadd [#allocation3], 4294967168  ;;  %v21_v0 = vld [vmem:[#allocation2] sm:$0xff]  ;;  %s92_s18 = smov 1   ;;  %s93_s19 = smov [#allocation5]  }
  0x13   :  { %22 = vrot.lane.b32.xlu0 %v21_v0, %s92_s18  ;;  %s31_s20 = sshll.u32 %s93_s19, 4  ;;  %s32_s20 = int_to_ptr.vmem [resolvable:$true] %s31_s20 }
  0x14   :  { %s65_s21 = scalar_lea.vmem %s32_s20, 128  ;;  %p70_p9 = scmp.lt.s32.totalorder %s32_s20, %s32_s20 }
  0x15   :  { %p66_p8 = scmp.ne.s32.totalorder %s32_s20, %s65_s21  ;;  %p71_p10 = scmp.lt.s32.totalorder %s65_s21, %s65_s21 }
  0x17   :  { %p72_p11 = por %p71_p10, %p70_p9 }
  0x19   :  { %p73_p12 = pnand %p72_p11, %p66_p8 }
  0x85   :  { %v23_v1 = vpop.permute.xlu0 %22 }
  0x86   :  { %24 = vst [vmem:[#allocation5] sm:$0xff] %v23_v1 }
  0x87   :  { %76 = shalt.err (!%p73_p12)
}
  0x88   :  { %s77_s0 = scalar_lea.hbm %s129_s1, 128 }
  0x89   :  { %p78_p13 = scmp.ne.s32.totalorder %s129_s1, %s77_s0  ;;  %p81_p0 = scmp.lt.u32.totalorder %s77_s0, %s129_s1 }
  0x8b   :  { %p83_p1 = pnand %p81_p0, %p78_p13 }
  0x8d   :  { %86 = shalt.err (!%p83_p1)
}
  0x8e   :  { %34 = dma.vmem_to_hbm [thread:$0]  %s32_s20, 128, %s129_s1, [#allocation4]  }
  0x8f   :  { %89 = dma.done.wait [#allocation4], 128  }
  0x90   :  { %90 = vsyncadd [#allocation4], 4294967168 }
  0x91   :  { %38 = vsyncpa [#allocation3], 1 }
  0x92   :  { %39 = vsyncpa [#allocation4], 1 }

</bundles_post_ra>
